<compile_context>
chip_gen: v5e
topology: v5e:2x2
jax: 0.10.0
libtpu: 0.0.40
codegen_flags: <defaults>
</compile_context>

<pallas_src>
import jax
import jax.numpy as jnp
from jax.experimental import pallas as pl
from jax.experimental.pallas import tpu as pltpu


# ----------------------------------------------------------------------------
# Kernels
# ----------------------------------------------------------------------------
def _kl_div_rowsum_kernel(x_ref, y_ref, rs_ref):
    """Per-row partial sums of the KL-div element loss.

    x_ref, y_ref : (TN, Cp) VMEM tiles (log-probs / probs)
    rs_ref       : (TN, 1)  per-row sum of y*(log(y)-x) over the class axis
    """
    x = x_ref[...].astype(jnp.float32)
    y = y_ref[...].astype(jnp.float32)
    pos = y > 0.0
    safe_y = jnp.where(pos, y, 1.0)                       # avoid log(0)
    elem = jnp.where(pos, y * (jnp.log(safe_y) - x), 0.0)  # (TN, Cp); padding -> 0
    rs_ref[...] = jnp.sum(elem, axis=1, keepdims=True)     # XLU reduce (free slot)


def _kl_div_elem_kernel(x_ref, y_ref, out_ref):
    """Element-wise KL-div loss (reduce=False path).

    x_ref, y_ref : (TN, Cp) VMEM tiles
    out_ref      : (TN, Cp) element-wise loss (lane-dense store)
    """
    x = x_ref[...].astype(jnp.float32)
    y = y_ref[...].astype(jnp.float32)
    pos = y > 0.0
    safe_y = jnp.where(pos, y, 1.0)
    out_ref[...] = jnp.where(pos, y * (jnp.log(safe_y) - x), 0.0).astype(out_ref.dtype)


# ----------------------------------------------------------------------------
# Wrapper
# ----------------------------------------------------------------------------
def _round_up(v, m):
    return pl.cdiv(v, m) * m


def _choose_tile_rows(m_rows, c_pad, bytes_per_elem=4, per_buffer_budget=2 << 20):
    """Pick a row-tile size: multiple of 8, bounded by a per-buffer VMEM budget.

    2 inputs x 2 pipeline buffers x (tile bytes) must stay well inside the
    scoped-VMEM limit on every TPU generation (v5e default 16 MiB is the
    tightest), so keep each single buffer <= ~2 MiB.
    """
    tn = per_buffer_budget // (c_pad * bytes_per_elem)
    tn = max(8, (tn // 8) * 8)
    tn = min(tn, 1024)                      # diminishing returns past ~1K rows
    tn = min(tn, _round_up(m_rows, 8))      # don't over-pad tiny batches
    return int(tn)


def kl_div_loss(x, y, size_average=True, reduce=True):
    """Forward pass of torch.nn.KLDivLoss. x: log-probs, y: probs, same shape."""
    assert x.shape == y.shape, "input and target must have the same shape"
    orig_shape = x.shape
    n_elem = x.size

    # Flatten to (rows, classes); class axis maps to the TPU lane dimension.
    if x.ndim >= 2:
        c = orig_shape[-1]
        x2 = x.reshape(-1, c)
        y2 = y.reshape(-1, c)
    else:
        x2 = x.reshape(1, -1)
        y2 = y.reshape(1, -1)
    m, c = x2.shape

    # Lane-dense class axis + row padding to a whole number of tiles.
    c_pad = _round_up(c, 128)
    tn = _choose_tile_rows(m, c_pad)
    m_pad = _round_up(m, tn)
    if (m_pad, c_pad) != (m, c):
        # Pad with zeros: y == 0 => element loss is exactly 0, so padded
        # rows/classes never contaminate the reduction.
        x2 = jnp.pad(x2, ((0, m_pad - m), (0, c_pad - c)))
        y2 = jnp.pad(y2, ((0, m_pad - m), (0, c_pad - c)))

    grid = (m_pad // tn,)
    in_specs = [
        pl.BlockSpec((tn, c_pad), lambda i: (i, 0)),
        pl.BlockSpec((tn, c_pad), lambda i: (i, 0)),
    ]
    compiler_params = pltpu.CompilerParams(
        dimension_semantics=("parallel",),          # independent row tiles (2x on v7x megacore)
        vmem_limit_bytes=32 * 1024 * 1024,
    )
    # TODO(synk): for very large class dims (> ~512K f32 per row) add a second
    # "arbitrary" grid axis over C with a (TN, 1) VMEM accumulator.

    if reduce:
        # Per-row partial sums only (minor-dim-1 output, traffic = 1/C of inputs);
        # final tiny reduction happens in the wrapper so the grid stays parallel.
        rowsums = pl.pallas_call(
            _kl_div_rowsum_kernel,
            out_shape=jax.ShapeDtypeStruct((m_pad, 1), jnp.float32),
            grid=grid,
            in_specs=in_specs,
            out_specs=pl.BlockSpec((tn, 1), lambda i: (i, 0)),
            compiler_params=compiler_params,
        )(x2, y2)
        total = jnp.sum(rowsums)
        if size_average:
            return total / n_elem
        return total

    # reduce=False: element-wise loss, lane-dense (TN, Cp) stores.
    out = pl.pallas_call(
        _kl_div_elem_kernel,
        out_shape=jax.ShapeDtypeStruct((m_pad, c_pad), x.dtype),
        grid=grid,
        in_specs=in_specs,
        out_specs=pl.BlockSpec((tn, c_pad), lambda i: (i, 0)),
        compiler_params=compiler_params,
    )(x2, y2)
    return out[:m, :c].reshape(orig_shape)


# ----------------------------------------------------------------------------
# Pure-JAX reference (matches PyTorch F.kl_div semantics)
# ----------------------------------------------------------------------------
def _reference(x, y, size_average=True, reduce=True):
    x = x.astype(jnp.float32)
    y = y.astype(jnp.float32)
    pos = y > 0.0
    elem = jnp.where(pos, y * (jnp.log(jnp.where(pos, y, 1.0)) - x), 0.0)
    if not reduce:
        return elem
    return elem.mean() if size_average else elem.sum()


if __name__ == "__main__":
    key = jax.random.PRNGKey(0)
    k1, k2, k3, k4 = jax.random.split(key, 4)

    # 4-D input (criterion is element-wise over arbitrary trailing dims).
    shape = (2, 4, 16, 16)
    x = jax.nn.log_softmax(jax.random.normal(k1, shape, dtype=jnp.float32), axis=-1)
    y = jax.nn.softmax(jax.random.normal(k2, shape, dtype=jnp.float32), axis=-1)

    out_mean = jax.block_until_ready(kl_div_loss(x, y, size_average=True, reduce=True))
    out_sum = jax.block_until_ready(kl_div_loss(x, y, size_average=False, reduce=True))
    out_elem = jax.block_until_ready(kl_div_loss(x, y, reduce=False))

    assert jnp.allclose(out_mean, _reference(x, y, True, True), atol=1e-5, rtol=1e-5)
    assert jnp.allclose(out_sum, _reference(x, y, False, True), atol=1e-4, rtol=1e-5)
    assert jnp.allclose(out_elem, _reference(x, y, reduce=False), atol=1e-6, rtol=1e-5)

    # 2-D case with non-aligned class dim (exercises the lane padding path),
    # matching the docstring example shape (batch=5, classes=10).
    x2 = jax.nn.log_softmax(jax.random.normal(k3, (5, 10), dtype=jnp.float32), axis=1)
    y2 = jax.nn.softmax(jax.random.normal(k4, (5, 10), dtype=jnp.float32), axis=1)

    out2_sum = jax.block_until_ready(kl_div_loss(x2, y2, size_average=False, reduce=True))
    out2_elem = jax.block_until_ready(kl_div_loss(x2, y2, reduce=False))

    assert jnp.allclose(out2_sum, _reference(x2, y2, False, True), atol=1e-5, rtol=1e-5)
    assert jnp.allclose(out2_elem, _reference(x2, y2, reduce=False), atol=1e-6, rtol=1e-5)

    print("KERNEL_OK")
</pallas_src>

<mosaic_0001>
module attributes {stable_mosaic.version = 11 : i64} {
  func.func @_kl_div_rowsum_kernel(%arg0: i32, %arg1: memref<128x128xf32, #tpu.memory_space<vmem>>, %arg2: memref<128x128xf32, #tpu.memory_space<vmem>>, %arg3: memref<128x1xf32, #tpu.memory_space<vmem>>) attributes {dimension_semantics = [#tpu.dimension_semantics<parallel>], iteration_bounds = array<i64: 1>, scalar_prefetch = 0 : i64, scratch_operands = 0 : i64, tpu.core_type = #tpu.core_type<tc>, window_params = [{transform_indices = @transform_0, window_bounds = array<i64: 128, 128>}, {transform_indices = @transform_1, window_bounds = array<i64: 128, 128>}, {transform_indices = @transform_2, window_bounds = array<i64: 128, 1>}]} {
    %c0 = arith.constant 0 : index
    %c0_0 = arith.constant 0 : index
    %0 = vector.load %arg1[%c0, %c0_0] : memref<128x128xf32, #tpu.memory_space<vmem>>, vector<128x128xf32>
    %c0_1 = arith.constant 0 : index
    %c0_2 = arith.constant 0 : index
    %1 = vector.load %arg2[%c0_1, %c0_2] : memref<128x128xf32, #tpu.memory_space<vmem>>, vector<128x128xf32>
    %cst = arith.constant 0.000000e+00 : f32
    %2 = vector.broadcast %cst : f32 to vector<128x128xf32>
    %3 = arith.cmpf ogt, %1, %2 : vector<128x128xf32>
    %cst_3 = arith.constant 1.000000e+00 : f32
    %4 = vector.broadcast %cst_3 : f32 to vector<128x128xf32>
    %5 = arith.select %3, %1, %4 : vector<128x128xi1>, vector<128x128xf32>
    %6 = math.log %5 : vector<128x128xf32>
    %7 = arith.subf %6, %0 : vector<128x128xf32>
    %8 = arith.mulf %1, %7 : vector<128x128xf32>
    %cst_4 = arith.constant 0.000000e+00 : f32
    %9 = vector.broadcast %cst_4 : f32 to vector<128x128xf32>
    %10 = arith.select %3, %8, %9 : vector<128x128xi1>, vector<128x128xf32>
    %cst_5 = arith.constant dense<0.000000e+00> : vector<128xf32>
    %11 = vector.multi_reduction <add>, %10, %cst_5 [1] : vector<128x128xf32> to vector<128xf32>
    %12 = vector.shape_cast %11 : vector<128xf32> to vector<128x1xf32>
    %c0_6 = arith.constant 0 : index
    %c0_7 = arith.constant 0 : index
    %13 = vector.load %arg3[%c0_6, %c0_7] : memref<128x1xf32, #tpu.memory_space<vmem>>, vector<128x1xf32>
    tpu.vector_store %arg3[%c0_6, %c0_7], %12 {strides = array<i32>} : memref<128x1xf32, #tpu.memory_space<vmem>>, vector<128x1xf32>,
    return
  }
  func.func @transform_0(%arg0: i32) -> (i32, i32) {
    %c0_i32 = arith.constant 0 : i32
    %c0_i32_0 = arith.constant 0 : i32
    return %arg0, %c0_i32 : i32, i32
  }
  func.func @transform_1(%arg0: i32) -> (i32, i32) {
    %c0_i32 = arith.constant 0 : i32
    %c0_i32_0 = arith.constant 0 : i32
    return %arg0, %c0_i32 : i32, i32
  }
  func.func @transform_2(%arg0: i32) -> (i32, i32) {
    %c0_i32 = arith.constant 0 : i32
    %c0_i32_0 = arith.constant 0 : i32
    return %arg0, %c0_i32 : i32, i32
  }
}

</mosaic_0001>

<bundles_post_ra>
// kernel: tpu_custom_call.1
= control target key start
LH: loop header
LB: loop body
LE: loop exit
PB: predicated region body
PF: predicated region fallthrough
CT: control target
= control target key end

     0   :  { %7 = vsyncpa [#allocation3], 0  ;;  %s563_s0 = inlined_call_operand.hbm [shape: f32[128,128], index: 0, kind: input, shape index: {}]   ;;  %s564_s1 = inlined_call_operand.hbm [shape: f32[128,128], index: 1, kind: input, shape index: {}]   ;;  %s565_s2 = inlined_call_operand.vmem [shape: f32[128,1], index: 2, kind: output, shape index: {}]  }
   0x1   :  { %s13_s11 = sshll.u32 %s563_s0, 4  ;;  %s14_s11 = int_to_ptr.hbm [resolvable:$true] %s13_s11 }
   0x2   :  { %8 = vsyncpa [#allocation5], 0  ;;  %s330_s12 = smov [#allocation2]   ;;  %s26_s16 = sshll.u32 %s564_s1, 4  ;;  %s27_s16 = int_to_ptr.hbm [resolvable:$true] %s26_s16 }
   0x3   :  { %s15_s13 = sshll.u32 %s330_s12, 4  ;;  %s331_s17 = smov 128   ;;  %s16_s13 = int_to_ptr.vmem [resolvable:$true] %s15_s13 }
   0x4   :  { %s332_s18 = smov 8   ;;  %s333_s19 = smov [#allocation4]  }
   0x5   :  { %21 = dma.hbm_to_vmem [thread:$0]  %s14_s11, 2048, %s16_s13, [#allocation3], %s331_s17, %s331_s17, %s332_s18  }
   0x6   :  { %s28_s20 = sshll.u32 %s333_s19, 4  ;;  %s29_s20 = int_to_ptr.vmem [resolvable:$true] %s28_s20 }
   0x7   :  { %34 = dma.hbm_to_vmem [thread:$0]  %s27_s16, 2048, %s29_s20, [#allocation5], %s331_s17, %s331_s17, %s332_s18  }
   0x8   :  { %326 = dma.done.wait [#allocation3], 2048  }
   0x9   :  { %327 = vsyncadd [#allocation3], 4294965248 }
   0xa   :  { %328 = dma.done.wait [#allocation5], 2048  }
   0xb   :  { %329 = vsyncadd [#allocation5], 4294965248  ;;  %v355_v0 = vld [vmem:[#allocation4] sm:$0xff]  ;;  %v360_v2 = vld [vmem:[#allocation4 + $0x10] sm:$0xff] }
   0xc   :  { %vm75_vm0 = vcmp.gt.f32.partialorder %v355_v0, 0.0  ;;  %v358_v1 = vld [vmem:[#allocation4 + $0x20] sm:$0xff]  ;;  %vm77_vm2 = vcmp.gt.f32.partialorder %v360_v2, 0.0  ;;  %v367_v4 = vld [vmem:[#allocation4 + $0x8] sm:$0xff]  ;;  %v378_v8 = vld [vmem:[#allocation4 + $0x18] sm:$0xff] }
   0xd   :  { %v91_v3 = vsel %vm75_vm0, %v355_v0, 1.0  ;;  %vm79_vm1 = vcmp.gt.f32.partialorder %v358_v1, 0.0  ;;  %v93_v6 = vsel %vm77_vm2, %v360_v2, 1.0  ;;  %vm76_vm3 = vcmp.gt.f32.partialorder %v367_v4, 0.0  ;;  %v376_v7 = vld [vmem:[#allocation4 + $0x28] sm:$0xff]  ;;  %v385_v10 = vld [vmem:[#allocation4 + $0x30] sm:$0xff] }
   0xe   :  { %246 = vlog2.f32 %v91_v3  ;;  %v95_v5 = vsel %vm79_vm1, %v358_v1, 1.0  ;;  %v92_v9 = vsel %vm76_vm3, %v367_v4, 1.0  ;;  %vm80_vm4 = vcmp.gt.f32.partialorder %v376_v7, 0.0  ;;  %v394_v13 = vld [vmem:[#allocation4 + $0x40] sm:$0xff]  ;;  %v396_v14 = vld [vmem:[#allocation4 + $0x38] sm:$0xff]  ;;  %v409_v18 = vld [vmem:[#allocation4 + $0x48] sm:$0xff] }
   0xf   :  { %248 = vlog2.f32 %v95_v5  ;;  %vm78_vm5 = vcmp.gt.f32.partialorder %v378_v8, 0.0  ;;  %v96_v11 = vsel %vm80_vm4, %v376_v7, 1.0  ;;  %vm81_vm6 = vcmp.gt.f32.partialorder %v385_v10, 0.0  ;;  %v43_v20 = vld [vmem:[#allocation2] sm:$0xff]  ;;  %v411_v21 = vld [vmem:[#allocation4 + $0x58] sm:$0xff]  ;;  %v413_v25 = vld [vmem:[#allocation4 + $0x50] sm:$0xff] }
  0x10   :  { %250 = vlog2.f32 %v93_v6  ;;  %v94_v12 = vsel %vm78_vm5, %v378_v8, 1.0  ;;  %v97_v15 = vsel %vm81_vm6, %v385_v10, 1.0  ;;  %vm83_vm7 = vcmp.gt.f32.partialorder %v394_v13, 0.0  ;;  %v47_v24 = vld [vmem:[#allocation2 + $0x20] sm:$0xff]  ;;  %v45_v28 = vld [vmem:[#allocation2 + $0x10] sm:$0xff]  ;;  %v44_v32 = vld [vmem:[#allocation2 + $0x8] sm:$0xff] }
  0x11   :  { %252 = vlog2.f32 %v92_v9  ;;  %vm82_vm8 = vcmp.gt.f32.partialorder %v396_v14, 0.0  ;;  %v99_v16 = vsel %vm83_vm7, %v394_v13, 1.0  ;;  %vm84_vm9 = vcmp.gt.f32.partialorder %v409_v18, 0.0  ;;  %v48_v36 = vld [vmem:[#allocation2 + $0x28] sm:$0xff]  ;;  %v46_v41 = vld [vmem:[#allocation2 + $0x18] sm:$0xff]  ;;  %v432_v53 = vld [vmem:[#allocation4 + $0x60] sm:$0xff] }
  0x12   :  { %254 = vlog2.f32 %v96_v11  ;;  %v98_v17 = vsel %vm82_vm8, %v396_v14, 1.0  ;;  %vm86_vm10 = vcmp.gt.f32.partialorder %v411_v21, 0.0  ;;  %vm85_vm11 = vcmp.gt.f32.partialorder %v413_v25, 0.0  ;;  %v436_v57 = vld [vmem:[#allocation4 + $0x70] sm:$0xff]  ;;  %v441_v61 = vld [vmem:[#allocation4 + $0x68] sm:$0xff]  ;;  %v51_v3 = vld [vmem:[#allocation2 + $0x40] sm:$0xff] }
  0x13   :  { %256 = vlog2.f32 %v94_v12  ;;  %v100_v42 = vsel %vm84_vm9, %v409_v18, 1.0  ;;  %v102_v47 = vsel %vm86_vm10, %v411_v21, 1.0  ;;  %v101_v52 = vsel %vm85_vm11, %v413_v25, 1.0  ;;  %v49_v63 = vld [vmem:[#allocation2 + $0x30] sm:$0xff] }
  0x14   :  { %v247_v19 = vpop.eup %246  ;;  %258 = vlog2.f32 %v97_v15  ;;  %vm87_vm12 = vcmp.gt.f32.partialorder %v432_v53, 0.0  ;;  %vm89_vm13 = vcmp.gt.f32.partialorder %v436_v57, 0.0  ;;  %vm88_vm14 = vcmp.gt.f32.partialorder %v441_v61, 0.0 }
  0x15   :  { %v249_v22 = vpop.eup %248  ;;  %v108_v23 = vmul.f32 0.6931472, %v247_v19  ;;  %260 = vlog2.f32 %v99_v16  ;;  %v103_v11 = vsel %vm87_vm12, %v432_v53, 1.0 }
  0x16   :  { %v251_v26 = vpop.eup %250  ;;  %v116_v27 = vmul.f32 0.6931472, %v249_v22  ;;  %262 = vlog2.f32 %v98_v17  ;;  %v105_v17 = vsel %vm89_vm13, %v436_v57, 1.0  ;;  %v104_v22 = vsel %vm88_vm14, %v441_v61, 1.0 }
  0x17   :  { %v253_v29 = vpop.eup %252  ;;  %v139_v30 = vsub.f32 %v108_v23, %v43_v20  ;;  %v112_v31 = vmul.f32 0.6931472, %v251_v26  ;;  %264 = vlog2.f32 %v100_v42  ;;  %v463_v23 = vld [vmem:[#allocation4 + $0x78] sm:$0xff] }
  0x18   :  { %v255_v33 = vpop.eup %254  ;;  %v143_v34 = vsub.f32 %v116_v27, %v47_v24  ;;  %v110_v35 = vmul.f32 0.6931472, %v253_v29  ;;  %266 = vlog2.f32 %v102_v47  ;;  %vm90_vm15 = vcmp.gt.f32.partialorder %v463_v23, 0.0  ;;  %v57_v47 = vld [vmem:[#allocation2 + $0x70] sm:$0xff] }
  0x19   :  { %v257_v37 = vpop.eup %256  ;;  %v155_v38 = vmul.f32 %v139_v30, %v355_v0  ;;  %v141_v39 = vsub.f32 %v112_v31, %v45_v28  ;;  %v118_v40 = vmul.f32 0.6931472, %v255_v33  ;;  %268 = vlog2.f32 %v101_v52  ;;  %v54_v30 = vld [vmem:[#allocation2 + $0x58] sm:$0xff] }
  0x1a   :  { %v259_v43 = vpop.eup %258  ;;  %v159_v44 = vmul.f32 %v143_v34, %v358_v1  ;;  %v140_v45 = vsub.f32 %v110_v35, %v44_v32  ;;  %v114_v46 = vmul.f32 0.6931472, %v257_v37  ;;  %270 = vlog2.f32 %v103_v11  ;;  %v53_v32 = vld [vmem:[#allocation2 + $0x50] sm:$0xff] }
  0x1b   :  { %v261_v48 = vpop.eup %260  ;;  %v171_v49 = vsel %vm75_vm0, %v155_v38, 0.0  ;;  %v157_v50 = vmul.f32 %v141_v39, %v360_v2  ;;  %v144_v51 = vsub.f32 %v118_v40, %v48_v36  ;;  %v120_v60 = vmul.f32 0.6931472, %v259_v43  ;;  %v50_v2 = vld [vmem:[#allocation2 + $0x38] sm:$0xff] }
  0x1c   :  { %v263_v54 = vpop.eup %262  ;;  %187 = vadd.xlane.f32.xlu0 %v171_v49  ;;  %v175_v55 = vsel %vm79_vm1, %v159_v44, 0.0  ;;  %v142_v56 = vsub.f32 %v114_v46, %v46_v41  ;;  %v156_v59 = vmul.f32 %v140_v45, %v367_v4  ;;  %v124_v0 = vmul.f32 0.6931472, %v261_v48  ;;  %v55_v45 = vld [vmem:[#allocation2 + $0x60] sm:$0xff]  ;;  %v56_v49 = vld [vmem:[#allocation2 + $0x68] sm:$0xff] }
  0x1d   :  { %195 = vadd.xlane.f32.xlu2 %v175_v55  ;;  %v173_v58 = vsel %vm77_vm2, %v157_v50, 0.0  ;;  %v160_v62 = vmul.f32 %v144_v51, %v376_v7  ;;  %v122_v5 = vmul.f32 0.6931472, %v263_v54  ;;  %v145_v9 = vsub.f32 %v120_v60, %v49_v63  ;;  %v265_v12 = vpop.eup %264 }
  0x1e   :  { %191 = vadd.xlane.f32.xlu1 %v173_v58  ;;  %v158_v1 = vmul.f32 %v142_v56, %v378_v8  ;;  %v172_v6 = vsel %vm76_vm3, %v156_v59, 0.0  ;;  %v147_v16 = vsub.f32 %v124_v0, %v51_v3  ;;  %v267_v19 = vpop.eup %266  ;;  %v126_v26 = vmul.f32 0.6931472, %v265_v12  ;;  %v52_v8 = vld [vmem:[#allocation2 + $0x48] sm:$0xff] }
  0x1f   :  { %v176_v15 = vsel %vm80_vm4, %v160_v62, 0.0  ;;  %v146_v4 = vsub.f32 %v122_v5, %v50_v2  ;;  %v269_v24 = vpop.eup %268  ;;  %v161_v7 = vmul.f32 %v145_v9, %v385_v10  ;;  %272 = vlog2.f32 %v105_v17 }
  0x20   :  { %v174_v20 = vsel %vm78_vm5, %v158_v1, 0.0  ;;  %v163_v27 = vmul.f32 %v147_v16, %v394_v13  ;;  %v130_v28 = vmul.f32 0.6931472, %v267_v19  ;;  %274 = vlog2.f32 %v104_v22  ;;  %v271_v36 = vpop.eup %270 }
  0x21   :  { %v162_v29 = vmul.f32 %v146_v4, %v396_v14  ;;  %v128_v31 = vmul.f32 0.6931472, %v269_v24  ;;  %v177_v33 = vsel %vm81_vm6, %v161_v7, 0.0  ;;  %v148_v34 = vsub.f32 %v126_v26, %v52_v8 }
  0x22   :  { %v106_v35 = vsel %vm90_vm15, %v463_v23, 1.0  ;;  %v179_v37 = vsel %vm83_vm7, %v163_v27, 0.0  ;;  %v150_v38 = vsub.f32 %v130_v28, %v54_v30  ;;  %v132_v43 = vmul.f32 0.6931472, %v271_v36 }
  0x23   :  { %v178_v40 = vsel %vm82_vm8, %v162_v29, 0.0  ;;  %v149_v41 = vsub.f32 %v128_v31, %v53_v32  ;;  %276 = vlog2.f32 %v106_v35  ;;  %v164_v10 = vmul.f32 %v148_v34, %v409_v18  ;;  %v58_v18 = vld [vmem:[#allocation2 + $0x78] sm:$0xff] }
  0x24   :  { %189 = vadd.xlane.f32.xlu0 %v172_v6  ;;  %v166_v44 = vmul.f32 %v150_v38, %v411_v21  ;;  %v151_v50 = vsub.f32 %v132_v43, %v55_v45  ;;  %vm219_vm0 = vcmask 7168  }
  0x25   :  { %197 = vadd.xlane.f32.xlu2 %v176_v15  ;;  %v273_v39 = vpop.eup %272  ;;  %v165_v13 = vmul.f32 %v149_v41, %v413_v25  ;;  %v180_v14 = vsel %vm84_vm9, %v164_v10, 0.0 }
  0x26   :  { %193 = vadd.xlane.f32.xlu1 %v174_v20  ;;  %v275_v42 = vpop.eup %274  ;;  %v136_v46 = vmul.f32 0.6931472, %v273_v39  ;;  %v182_v52 = vsel %vm86_vm10, %v166_v44, 0.0  ;;  %v167_v58 = vmul.f32 %v151_v50, %v432_v53 }
  0x27   :  { %v134_v48 = vmul.f32 0.6931472, %v275_v42  ;;  %v181_v55 = vsel %vm85_vm11, %v165_v13, 0.0 }
  0x28   :  { %v153_v54 = vsub.f32 %v136_v46, %v57_v47  ;;  %v183_v21 = vsel %vm87_vm12, %v167_v58, 0.0 }
  0x29   :  { %v277_v51 = vpop.eup %276  ;;  %v152_v56 = vsub.f32 %v134_v48, %v56_v49 }
  0x2a   :  { %v138_v59 = vmul.f32 0.6931472, %v277_v51  ;;  %v169_v60 = vmul.f32 %v153_v54, %v436_v57 }
  0x2b   :  { %v168_v62 = vmul.f32 %v152_v56, %v441_v61 }
  0x2c   :  { %199 = vadd.xlane.f32.xlu0 %v177_v33  ;;  %v154_v63 = vsub.f32 %v138_v59, %v58_v18  ;;  %v185_v25 = vsel %vm89_vm13, %v169_v60, 0.0 }
  0x2d   :  { %203 = vadd.xlane.f32.xlu2 %v179_v37  ;;  %v184_v0 = vsel %vm88_vm14, %v168_v62, 0.0 }
  0x2e   :  { %201 = vadd.xlane.f32.xlu1 %v178_v40  ;;  %v170_v1 = vmul.f32 %v154_v63, %v463_v23 }
  0x30   :  { %v186_v3 = vsel %vm90_vm15, %v170_v1, 0.0 }
  0x34   :  { %205 = vadd.xlane.f32.xlu0 %v180_v14 }
  0x35   :  { %209 = vadd.xlane.f32.xlu2 %v182_v52 }
  0x36   :  { %207 = vadd.xlane.f32.xlu1 %v181_v55 }
  0x3c   :  { %211 = vadd.xlane.f32.xlu0 %v183_v21 }
  0x3d   :  { %215 = vadd.xlane.f32.xlu2 %v185_v25 }
  0x3e   :  { %213 = vadd.xlane.f32.xlu1 %v184_v0 }
  0x44   :  { %217 = vadd.xlane.f32.xlu0 %v186_v3 }
  0x8f   :  { %v188_v5 = vpop.xlane.xlu0 %187 }
  0x90   :  { %220 = vst.msk [vmem:[%s565_s2] sm:$0xff] %vm219_vm0, %v188_v5  ;;  %v196_v53 = vpop.xlane.xlu2 %195 }
  0x91   :  { %224 = vst.msk [vmem:[%s565_s2 + $0x20] sm:$0xff] %vm219_vm0, %v196_v53  ;;  %v192_v57 = vpop.xlane.xlu1 %191 }
  0x92   :  { %222 = vst.msk [vmem:[%s565_s2 + $0x10] sm:$0xff] %vm219_vm0, %v192_v57 }
  0x97   :  { %v190_v61 = vpop.xlane.xlu0 %189 }
  0x98   :  { %221 = vst.msk [vmem:[%s565_s2 + $0x8] sm:$0xff] %vm219_vm0, %v190_v61  ;;  %v198_v2 = vpop.xlane.xlu2 %197 }
  0x99   :  { %225 = vst.msk [vmem:[%s565_s2 + $0x28] sm:$0xff] %vm219_vm0, %v198_v2  ;;  %v194_v6 = vpop.xlane.xlu1 %193 }
  0x9a   :  { %223 = vst.msk [vmem:[%s565_s2 + $0x18] sm:$0xff] %vm219_vm0, %v194_v6 }
  0x9f   :  { %v200_v9 = vpop.xlane.xlu0 %199 }
  0xa0   :  { %226 = vst.msk [vmem:[%s565_s2 + $0x30] sm:$0xff] %vm219_vm0, %v200_v9  ;;  %v204_v11 = vpop.xlane.xlu2 %203 }
  0xa1   :  { %228 = vst.msk [vmem:[%s565_s2 + $0x40] sm:$0xff] %vm219_vm0, %v204_v11  ;;  %v202_v12 = vpop.xlane.xlu1 %201 }
  0xa2   :  { %227 = vst.msk [vmem:[%s565_s2 + $0x38] sm:$0xff] %vm219_vm0, %v202_v12 }
  0xa7   :  { %v206_v15 = vpop.xlane.xlu0 %205 }
  0xa8   :  { %229 = vst.msk [vmem:[%s565_s2 + $0x48] sm:$0xff] %vm219_vm0, %v206_v15  ;;  %v210_v16 = vpop.xlane.xlu2 %209 }
  0xa9   :  { %231 = vst.msk [vmem:[%s565_s2 + $0x58] sm:$0xff] %vm219_vm0, %v210_v16  ;;  %v208_v17 = vpop.xlane.xlu1 %207 }
  0xaa   :  { %230 = vst.msk [vmem:[%s565_s2 + $0x50] sm:$0xff] %vm219_vm0, %v208_v17 }
  0xaf   :  { %v212_v19 = vpop.xlane.xlu0 %211 }
  0xb0   :  { %232 = vst.msk [vmem:[%s565_s2 + $0x60] sm:$0xff] %vm219_vm0, %v212_v19  ;;  %v216_v20 = vpop.xlane.xlu2 %215 }
  0xb1   :  { %234 = vst.msk [vmem:[%s565_s2 + $0x70] sm:$0xff] %vm219_vm0, %v216_v20  ;;  %v214_v4 = vpop.xlane.xlu1 %213 }
  0xb2   :  { %233 = vst.msk [vmem:[%s565_s2 + $0x68] sm:$0xff] %vm219_vm0, %v214_v4 }
  0xb7   :  { %v218_v22 = vpop.xlane.xlu0 %217 }
  0xb8   :  { %235 = vst.msk [vmem:[%s565_s2 + $0x78] sm:$0xff] %vm219_vm0, %v218_v22 }
  0xb9   :  { %240 = vsyncpa [#allocation3], 1 }
  0xba   :  { %241 = vsyncpa [#allocation5], 1 }

</bundles_post_ra>
